<compile_context>
chip_gen: v6e
topology: v6e:2x2x1
jax: 0.10.0
libtpu: 0.0.40
codegen_flags: <defaults>
</compile_context>

<pallas_src>
import functools

import jax
import jax.numpy as jnp
from jax.experimental import pallas as pl
from jax.experimental.pallas import tpu as pltpu


def channel_attn_kernel(alpha_ref, x_ref, w1t_ref, w2t_ref, out_ref,
                        sum_ref, max_ref, *, hw, t_hw, ragged):
    # alpha_ref: (1,) SMEM      -- PReLU slope (single shared parameter)
    # x_ref:     (tn, C, t_hw)  -- spatial tile of the input (input dtype)
    # w1t_ref:   (C, Cr)        -- conv1 weight, pre-transposed
    # w2t_ref:   (Cr, C)        -- conv2 weight, pre-transposed
    # out_ref:   (tn, C)        -- sigmoid(MLP(avgpool) + MLP(maxpool))
    # sum_ref / max_ref: (tn, C) f32 scratch accumulators
    j = pl.program_id(1)                      # spatial (reduction) tile index
    last = pl.num_programs(1) - 1

    @pl.when(j == 0)
    def _init():
        sum_ref[...] = jnp.zeros_like(sum_ref)
        max_ref[...] = jnp.full_like(max_ref, -jnp.inf)

    x = x_ref[...]                            # keep input dtype through the DMA

    def _accumulate_full():
        # Steady state: unmasked reduce. Sum in f32; max in native dtype
        # (exact), casting only the reduced (tn, C) result.
        sum_ref[...] += jnp.sum(x.astype(jnp.float32), axis=-1)
        max_ref[...] = jnp.maximum(max_ref[...],
                                   jnp.max(x, axis=-1).astype(jnp.float32))

    if not ragged:
        _accumulate_full()                    # trace-time: mask never emitted
    else:
        @pl.when(j != last)
        def _acc_body():
            _accumulate_full()

        @pl.when(j == last)
        def _acc_masked():
            # Lane-only iota; broadcasting expands it in the compare/where.
            lane = jax.lax.broadcasted_iota(jnp.int32, (1, 1, t_hw), 2)
            valid = (j * t_hw + lane) < hw
            xf = x.astype(jnp.float32)
            sum_ref[...] += jnp.sum(jnp.where(valid, xf, 0.0), axis=-1)
            max_ref[...] = jnp.maximum(
                max_ref[...],
                jnp.max(jnp.where(valid, xf, -jnp.inf), axis=-1))

    @pl.when(j == last)
    def _finalize():
        tn = out_ref.shape[0]
        avg = sum_ref[...] * (1.0 / hw)                   # (tn, C)
        mx = max_ref[...]                                 # (tn, C)

        # Fuse avg/max through one pass of the shared MLP (2 matmuls, not 4).
        p = jnp.concatenate([avg, mx], axis=0)            # (2*tn, C)
        w1t = w1t_ref[...].astype(jnp.float32)            # (C, Cr)
        w2t = w2t_ref[...].astype(jnp.float32)            # (Cr, C)
        a = alpha_ref[0]                                  # PReLU slope scalar

        h = jnp.dot(p, w1t, preferred_element_type=jnp.float32)   # (2*tn, Cr)
        h = jnp.where(h > 0, h, a * h)                             # PReLU
        y = jnp.dot(h, w2t, preferred_element_type=jnp.float32)   # (2*tn, C)

        out = jax.nn.sigmoid(y[:tn] + y[tn:])
        out_ref[...] = out.astype(out_ref.dtype)


def _vmem_capacity_bytes(default=64 * 1024 * 1024):
    """Physical VMEM of the attached TPU; conservative v7x default otherwise."""
    try:
        info = pltpu.get_tpu_info()
        return int(getattr(info, "vmem_capacity_bytes", default))
    except Exception:
        return default


def channel_attention(x_nchw, w1, w2, alpha, *, t_hw_max=2048):
    """x_nchw: (N, C, H, W). Returns (N, C, 1, 1) like the PyTorch module."""
    N, C, H, W = x_nchw.shape
    Cr = w1.shape[0]
    HW = H * W
    itemsize = jnp.dtype(x_nchw.dtype).itemsize

    # Per-generation sizing: one x block ~= VMEM/8 (8 MiB on v7x's 64 MiB,
    # 16 MiB on v5e/v6e's 128 MiB) so the double-buffered stream stays well
    # under the limit while amortizing the per-grid-step overhead.
    vmem_cap = _vmem_capacity_bytes()
    block_budget = max(2 * 1024 * 1024, vmem_cap // 8)

    # Batch tile: pad N to a multiple of 8 (padded rows are sliced off the
    # output) instead of a whole-batch fallback block; grow tn to 16/32 only
    # while >=2 batch tiles remain (both v7x TensorCores stay busy) and the
    # x block stays within budget.
    N_pad = ((N + 7) // 8) * 8
    tn = 8
    base_t_hw = min(HW, t_hw_max)
    for cand in (16, 32):
        if (N_pad % cand == 0 and N_pad // cand >= 2
                and cand * C * base_t_hw * itemsize <= block_budget):
            tn = cand

    # Lane-dense spatial tile: whole HW if it fits, else the largest
    # multiple-of-128 candidate (capped at t_hw_max) within the block budget.
    if HW <= t_hw_max and tn * C * HW * itemsize <= block_budget:
        t_hw = HW
    elif HW < 128:
        t_hw = HW                      # must take the full (non-128x) dim
    else:
        t_hw = 128
        for cand in (4096, 2048, 1024, 512, 256, 128):
            if (cand <= t_hw_max and cand <= HW
                    and tn * C * cand * itemsize <= block_budget):
                t_hw = cand
                break
    ragged = (HW % t_hw) != 0

    x_flat = x_nchw.reshape(N, C, HW)
    if N_pad > N:
        x_flat = jnp.pad(x_flat, ((0, N_pad - N), (0, 0), (0, 0)))

    # Pre-transpose the MLP weights so the kernel emits no in-kernel .T.
    w1t = jnp.transpose(w1)            # (C, Cr)
    w2t = jnp.transpose(w2)            # (Cr, C)

    grid = (N_pad // tn, pl.cdiv(HW, t_hw))

    block_bytes = tn * C * t_hw * itemsize
    vmem_need = 2 * block_bytes + 4 * 1024 * 1024     # x double-buffer + slack
    vmem_limit = min(int(vmem_cap * 0.85),
                     max(vmem_need, 32 * 1024 * 1024))

    cost = pl.CostEstimate(
        flops=2 * N_pad * C * HW + 8 * N_pad * C * Cr,
        transcendentals=2 * N_pad * C,
        bytes_accessed=N_pad * C * HW * itemsize + N_pad * C * itemsize
        + (w1.size + w2.size) * 4,
    )

    kernel = functools.partial(channel_attn_kernel,
                               hw=HW, t_hw=t_hw, ragged=ragged)

    out = pl.pallas_call(
        kernel,
        out_shape=jax.ShapeDtypeStruct((N_pad, C), x_nchw.dtype),
        grid_spec=pltpu.PrefetchScalarGridSpec(
            num_scalar_prefetch=1,                       # alpha -> SMEM
            grid=grid,
            in_specs=[
                pl.BlockSpec((tn, C, t_hw), lambda i, j, alpha: (i, 0, j)),
                pl.BlockSpec((C, Cr), lambda i, j, alpha: (0, 0)),   # resident
                pl.BlockSpec((Cr, C), lambda i, j, alpha: (0, 0)),   # resident
            ],
            out_specs=pl.BlockSpec((tn, C), lambda i, j, alpha: (i, 0)),
            scratch_shapes=[
                pltpu.VMEM((tn, C), jnp.float32),   # running sum
                pltpu.VMEM((tn, C), jnp.float32),   # running max
            ],
        ),
        compiler_params=pltpu.CompilerParams(
            dimension_semantics=("parallel", "arbitrary"),
            vmem_limit_bytes=vmem_limit,
        ),
        cost_estimate=cost,
    )(alpha, x_flat, w1t, w2t)

    return out[:N].reshape(N, C, 1, 1)


def reference(x_nchw, w1, w2, alpha):
    """Pure-JAX reference matching the PyTorch forward semantics."""
    avg = jnp.mean(x_nchw.astype(jnp.float32), axis=(2, 3))   # (N, C)
    mx = jnp.max(x_nchw.astype(jnp.float32), axis=(2, 3))     # (N, C)
    a = alpha[0]

    def mlp(p):
        h = p @ w1.T
        h = jnp.where(h > 0, h, a * h)
        return h @ w2.T

    out = jax.nn.sigmoid(mlp(avg) + mlp(mx))
    return out.reshape(*out.shape, 1, 1).astype(x_nchw.dtype)


if __name__ == "__main__":
    # Module config: channel=32, ratio=8 -> hidden = 4
    N, C, H, W = 2, 32, 16, 16
    ratio = 8
    Cr = C // ratio

    key = jax.random.PRNGKey(0)
    kx, kw1, kw2 = jax.random.split(key, 3)

    x = jax.random.normal(kx, (N, C, H, W), dtype=jnp.float32)
    # Conv2d(C, Cr, 1, bias=False) weight (Cr, C, 1, 1) squeezed, and vice versa.
    w1 = jax.random.normal(kw1, (Cr, C), dtype=jnp.float32) * 0.1
    w2 = jax.random.normal(kw2, (C, Cr), dtype=jnp.float32) * 0.1
    alpha = jnp.array([0.25], dtype=jnp.float32)   # nn.PReLU() default init

    out = channel_attention(x, w1, w2, alpha)
    jax.block_until_ready(out)

    ref = reference(x, w1, w2, alpha)
    assert out.shape == (N, C, 1, 1)
    assert jnp.allclose(out, ref, rtol=1e-5, atol=1e-5)

    print("KERNEL_OK")
</pallas_src>

<mosaic_0001>
module attributes {stable_mosaic.version = 11 : i64} {
  func.func @channel_attn_kernel(%arg0: i32, %arg1: i32, %arg2: memref<1xf32, #tpu.memory_space<smem>>, %arg3: memref<8x32x256xf32, #tpu.memory_space<vmem>>, %arg4: memref<32x4xf32, #tpu.memory_space<vmem>>, %arg5: memref<4x32xf32, #tpu.memory_space<vmem>>, %arg6: memref<8x32xf32, #tpu.memory_space<vmem>>, %arg7: memref<8x32xf32, #tpu.memory_space<vmem>>, %arg8: memref<8x32xf32, #tpu.memory_space<vmem>>) attributes {dimension_semantics = [#tpu.dimension_semantics<parallel>, #tpu.dimension_semantics<arbitrary>], iteration_bounds = array<i64: 1, 1>, scalar_prefetch = 1 : i64, scratch_operands = 2 : i64, tpu.core_type = #tpu.core_type<tc>, window_params = [{transform_indices = @transform_0, window_bounds = array<i64: 8, 32, 256>}, {pipeline_mode = #tpu.pipeline_mode<synchronous>, transform_indices = @transform_1, window_bounds = array<i64: 32, 4>}, {pipeline_mode = #tpu.pipeline_mode<synchronous>, transform_indices = @transform_2, window_bounds = array<i64: 4, 32>}, {transform_indices = @transform_3, window_bounds = array<i64: 8, 32>}]} {
    %c0_i32 = arith.constant 0 : i32
    %0 = arith.cmpi eq, %arg1, %c0_i32 : i32
    %1 = arith.extui %0 : i1 to i32
    %c0_i32_0 = arith.constant 0 : i32
    %2 = arith.cmpi ne, %1, %c0_i32_0 : i32
    scf.if %2 {
      %cst_14 = arith.constant 0.000000e+00 : f32
      %15 = vector.broadcast %cst_14 : f32 to vector<8x32xf32>
      %c0_15 = arith.constant 0 : index
      %c0_16 = arith.constant 0 : index
      %16 = vector.load %arg7[%c0_15, %c0_16] : memref<8x32xf32, #tpu.memory_space<vmem>>, vector<8x32xf32>
      tpu.vector_store %arg7[%c0_15, %c0_16], %15 {strides = array<i32>} : memref<8x32xf32, #tpu.memory_space<vmem>>, vector<8x32xf32>,
      %cst_17 = arith.constant 0xFF800000 : f32
      %17 = vector.broadcast %cst_17 : f32 to vector<8x32xf32>
      %c0_18 = arith.constant 0 : index
      %c0_19 = arith.constant 0 : index
      %18 = vector.load %arg8[%c0_18, %c0_19] : memref<8x32xf32, #tpu.memory_space<vmem>>, vector<8x32xf32>
      tpu.vector_store %arg8[%c0_18, %c0_19], %17 {strides = array<i32>} : memref<8x32xf32, #tpu.memory_space<vmem>>, vector<8x32xf32>,
    } else {
    }
    %c0 = arith.constant 0 : index
    %c0_1 = arith.constant 0 : index
    %c0_2 = arith.constant 0 : index
    %3 = vector.load %arg3[%c0, %c0_1, %c0_2] : memref<8x32x256xf32, #tpu.memory_space<vmem>>, vector<8x32x256xf32>
    %c0_3 = arith.constant 0 : index
    %c0_4 = arith.constant 0 : index
    %4 = vector.load %arg7[%c0_3, %c0_4] : memref<8x32xf32, #tpu.memory_space<vmem>>, vector<8x32xf32>
    %cst = arith.constant dense<0.000000e+00> : vector<8x32xf32>
    %5 = vector.multi_reduction <add>, %3, %cst [2] : vector<8x32x256xf32> to vector<8x32xf32>
    %6 = arith.addf %4, %5 : vector<8x32xf32>
    %c0_5 = arith.constant 0 : index
    %c0_6 = arith.constant 0 : index
    %7 = vector.load %arg7[%c0_5, %c0_6] : memref<8x32xf32, #tpu.memory_space<vmem>>, vector<8x32xf32>
    tpu.vector_store %arg7[%c0_5, %c0_6], %6 {strides = array<i32>} : memref<8x32xf32, #tpu.memory_space<vmem>>, vector<8x32xf32>,
    %c0_7 = arith.constant 0 : index
    %c0_8 = arith.constant 0 : index
    %8 = vector.load %arg8[%c0_7, %c0_8] : memref<8x32xf32, #tpu.memory_space<vmem>>, vector<8x32xf32>
    %cst_9 = arith.constant dense<0xFF800000> : vector<8x32xf32>
    %9 = vector.multi_reduction <maximumf>, %3, %cst_9 [2] : vector<8x32x256xf32> to vector<8x32xf32>
    %10 = arith.maximumf %8, %9 : vector<8x32xf32>
    %c0_10 = arith.constant 0 : index
    %c0_11 = arith.constant 0 : index
    %11 = vector.load %arg8[%c0_10, %c0_11] : memref<8x32xf32, #tpu.memory_space<vmem>>, vector<8x32xf32>
    tpu.vector_store %arg8[%c0_10, %c0_11], %10 {strides = array<i32>} : memref<8x32xf32, #tpu.memory_space<vmem>>, vector<8x32xf32>,
    %c0_i32_12 = arith.constant 0 : i32
    %12 = arith.cmpi eq, %arg1, %c0_i32_12 : i32
    %13 = arith.extui %12 : i1 to i32
    %c0_i32_13 = arith.constant 0 : i32
    %14 = arith.cmpi ne, %13, %c0_i32_13 : i32
    scf.if %14 {
      %c0_14 = arith.constant 0 : index
      %c0_15 = arith.constant 0 : index
      %15 = vector.load %arg7[%c0_14, %c0_15] : memref<8x32xf32, #tpu.memory_space<vmem>>, vector<8x32xf32>
      %cst_16 = arith.constant 3.906250e-03 : f32
      %16 = vector.broadcast %cst_16 : f32 to vector<8x32xf32>
      %17 = arith.mulf %15, %16 : vector<8x32xf32>
      %c0_17 = arith.constant 0 : index
      %c0_18 = arith.constant 0 : index
      %18 = vector.load %arg8[%c0_17, %c0_18] : memref<8x32xf32, #tpu.memory_space<vmem>>, vector<8x32xf32>
      %19 = tpu.concatenate %17, %18 in 0 : vector<8x32xf32>, vector<8x32xf32> -> vector<16x32xf32>
      %c0_19 = arith.constant 0 : index
      %c0_20 = arith.constant 0 : index
      %20 = vector.load %arg4[%c0_19, %c0_20] : memref<32x4xf32, #tpu.memory_space<vmem>>, vector<32x4xf32>
      %c0_21 = arith.constant 0 : index
      %c0_22 = arith.constant 0 : index
      %21 = vector.load %arg5[%c0_21, %c0_22] : memref<4x32xf32, #tpu.memory_space<vmem>>, vector<4x32xf32>
      %c0_23 = arith.constant 0 : index
      %22 = memref.load %arg2[%c0_23] : memref<1xf32, #tpu.memory_space<smem>>
      %cst_24 = arith.constant dense<0.000000e+00> : vector<16x4xf32>
      %23 = tpu.matmul %19, %20, %cst_24 {dimension_numbers = #tpu.dot_dimension_numbers<[1], [0], [0], [1], [0, 0, 1, 1], [], []>} : vector<16x32xf32>, vector<32x4xf32>, vector<16x4xf32> -> vector<16x4xf32>
      %cst_25 = arith.constant 0.000000e+00 : f32
      %24 = vector.broadcast %cst_25 : f32 to vector<16x4xf32>
      %25 = arith.cmpf ogt, %23, %24 : vector<16x4xf32>
      %26 = vector.broadcast %22 : f32 to vector<16x4xf32>
      %27 = arith.mulf %26, %23 : vector<16x4xf32>
      %28 = arith.select %25, %23, %27 : vector<16x4xi1>, vector<16x4xf32>
      %cst_26 = arith.constant dense<0.000000e+00> : vector<16x32xf32>
      %29 = tpu.matmul %28, %21, %cst_26 {dimension_numbers = #tpu.dot_dimension_numbers<[1], [0], [0], [1], [0, 0, 1, 1], [], []>} : vector<16x4xf32>, vector<4x32xf32>, vector<16x32xf32> -> vector<16x32xf32>
      %30 = vector.extract_strided_slice %29 {offsets = [0, 0], sizes = [8, 32], strides = [1, 1]} : vector<16x32xf32> to vector<8x32xf32>
      %31 = vector.extract_strided_slice %29 {offsets = [8, 0], sizes = [8, 32], strides = [1, 1]} : vector<16x32xf32> to vector<8x32xf32>
      %32 = arith.addf %30, %31 : vector<8x32xf32>
      %33 = arith.negf %32 : vector<8x32xf32>
      %34 = math.exp %33 : vector<8x32xf32>
      %cst_27 = arith.constant 1.000000e+00 : f32
      %35 = vector.broadcast %cst_27 : f32 to vector<8x32xf32>
      %36 = arith.addf %35, %34 : vector<8x32xf32>
      %37 = arith.divf %35, %36 : vector<8x32xf32>
      %c0_28 = arith.constant 0 : index
      %c0_29 = arith.constant 0 : index
      %38 = vector.load %arg6[%c0_28, %c0_29] : memref<8x32xf32, #tpu.memory_space<vmem>>, vector<8x32xf32>
      tpu.vector_store %arg6[%c0_28, %c0_29], %37 {strides = array<i32>} : memref<8x32xf32, #tpu.memory_space<vmem>>, vector<8x32xf32>,
    } else {
    }
    return
  }
  func.func @transform_0(%arg0: i32, %arg1: i32, %arg2: memref<1xf32, #tpu.memory_space<smem>>) -> (i32, i32, i32) {
    %c0_i32 = arith.constant 0 : i32
    %c0_i32_0 = arith.constant 0 : i32
    return %arg0, %c0_i32, %arg1 : i32, i32, i32
  }
  func.func @transform_1(%arg0: i32, %arg1: i32, %arg2: memref<1xf32, #tpu.memory_space<smem>>) -> (i32, i32) {
    %c0_i32 = arith.constant 0 : i32
    %c0_i32_0 = arith.constant 0 : i32
    %c0_i32_1 = arith.constant 0 : i32
    return %c0_i32, %c0_i32_0 : i32, i32
  }
  func.func @transform_2(%arg0: i32, %arg1: i32, %arg2: memref<1xf32, #tpu.memory_space<smem>>) -> (i32, i32) {
    %c0_i32 = arith.constant 0 : i32
    %c0_i32_0 = arith.constant 0 : i32
    %c0_i32_1 = arith.constant 0 : i32
    return %c0_i32, %c0_i32_0 : i32, i32
  }
  func.func @transform_3(%arg0: i32, %arg1: i32, %arg2: memref<1xf32, #tpu.memory_space<smem>>) -> (i32, i32) {
    %c0_i32 = arith.constant 0 : i32
    %c0_i32_0 = arith.constant 0 : i32
    return %arg0, %c0_i32 : i32, i32
  }
}

</mosaic_0001>

<bundles_post_ra>
// kernel: tpu_custom_call.1
= control target key start
LH: loop header
LB: loop body
LE: loop exit
PB: predicated region body
PF: predicated region fallthrough
CT: control target
= control target key end

     0   :  { %10 = vsyncpa [#allocation7], 0  ;;  %s1421_s0 = inlined_call_operand.<no memory space> [shape: f32[1], index: 0, kind: input, shape index: {}]   ;;  %s1422_s1 = inlined_call_operand.hbm [shape: f32[8,32,256], index: 1, kind: input, shape index: {}]   ;;  %s1423_s2 = inlined_call_operand.vmem [shape: f32[32,4], index: 2, kind: input, shape index: {}]   ;;  %s1424_s3 = inlined_call_operand.vmem [shape: f32[4,32], index: 3, kind: input, shape index: {}]   ;;  %s1425_s4 = inlined_call_operand.hbm [shape: f32[8,32], index: 4, kind: output, shape index: {}]  }
   0x1   :  { %11 = vsyncpa [#allocation8], 0  ;;  %s994_s15 = smov [#allocation6]  }
   0x2   :  { %s17_s16 = sshll.u32 %s994_s15, 4  ;;  %s18_s16 = int_to_ptr.vmem [resolvable:$true] %s17_s16 }
   0x3   :  { %s958_s17 = scalar_lea.vmem %s18_s16, 8192  ;;  %p963_p1 = scmp.lt.s32.totalorder %s18_s16, %s18_s16 }
   0x4   :  { %p959_p0 = scmp.ne.s32.totalorder %s18_s16, %s958_s17  ;;  %p964_p2 = scmp.lt.s32.totalorder %s958_s17, %s958_s17 }
   0x6   :  { %p965_p3 = por %p964_p2, %p963_p1 }
   0x8   :  { %p966_p4 = pnand %p965_p3, %p959_p0 }
   0xa   :  { %969 = shalt.err (!%p966_p4)
}
   0xb   :  { %s995_s18 = smov 256   ;;  %s996_s19 = smov 16  }
   0xc   :  { %23 = dma.hbm_to_vmem [thread:$0]  %s1422_s1, 8192, %s18_s16, [#allocation7], %s995_s18, %s995_s18, %s996_s19  }
   0xd   :  { %990 = dma.done.wait [#allocation7], 8192  }
   0xe   :  { %991 = vsyncadd [#allocation7], 4294959104  ;;  %v1028_v0 = vld [vmem:[#allocation6 + $0x40] sm:$0xff]  ;;  %v1030_v1 = vld [vmem:[#allocation6 + $0x48] sm:$0xff]  ;;  %vm35_vm0 = vcmask 261120   ;;  %vm242_vm1 = vcmask 130112  }
   0xf   :  { %v1032_v2 = vld [vmem:[#allocation6] sm:$0xff]  ;;  %v115_v3 = vadd.f32 %v1030_v1, %v1028_v0  ;;  %v1036_v4 = vld [vmem:[#allocation6 + $0x8] sm:$0xff]  ;;  %v1038_v5 = vld [vmem:[#allocation6 + $0x50] sm:$0xff]  ;;  %v422_v52 = vmax.f32 %v1028_v0, %v1030_v1  ;;  %vm249_vm2 = vcmask 195712   ;;  %vm256_vm3 = vcmask 261312  }
  0x10   :  { %v1040_v6 = vld [vmem:[#allocation6 + $0x58] sm:$0xff]  ;;  %v103_v7 = vadd.f32 %v1036_v4, %v1032_v2  ;;  %v1044_v8 = vld [vmem:[#allocation6 + $0x10] sm:$0xff]  ;;  %v1052_v12 = vld [vmem:[#allocation6 + $0x60] sm:$0xff]  ;;  %v410_v50 = vmax.f32 %v1032_v2, %v1036_v4  ;;  %vm391_vm4 = vcmask 1041409   ;;  %vm393_vm5 = vcmask 1042434  }
  0x11   :  { %v1046_v9 = vld [vmem:[#allocation6 + $0x18] sm:$0xff]  ;;  %116 = vadd.xlane.f32.xlu1 %v115_v3  ;;  %v118_v10 = vadd.f32 %v1040_v6, %v1038_v5  ;;  %v1054_v13 = vld [vmem:[#allocation6 + $0x68] sm:$0xff]  ;;  %v1056_v14 = vld [vmem:[#allocation6 + $0x20] sm:$0xff]  ;;  %v425_v57 = vmax.f32 %v1038_v5, %v1040_v6  ;;  %vm395_vm6 = vcmask 1043459   ;;  %vm397_vm7 = vcmask 1044484  }
  0x12   :  { %104 = vadd.xlane.f32.xlu0 %v103_v7  ;;  %v106_v11 = vadd.f32 %v1046_v9, %v1044_v8  ;;  %v1058_v15 = vld [vmem:[#allocation6 + $0x28] sm:$0xff]  ;;  %v121_v16 = vadd.f32 %v1054_v13, %v1052_v12  ;;  %v1064_v18 = vld [vmem:[#allocation6 + $0x90] sm:$0xff]  ;;  %v1066_v19 = vld [vmem:[#allocation6 + $0x98] sm:$0xff]  ;;  %v413_v53 = vmax.f32 %v1044_v8, %v1046_v9  ;;  %v428_v5 = vmax.f32 %v1052_v12, %v1054_v13 }
  0x13   :  { %v109_v17 = vadd.f32 %v1058_v15, %v1056_v14  ;;  %v1068_v20 = vld [vmem:[#allocation6 + $0x80] sm:$0xff]  ;;  %v1070_v21 = vld [vmem:[#allocation6 + $0x88] sm:$0xff]  ;;  %v130_v22 = vadd.f32 %v1066_v19, %v1064_v18  ;;  %v1076_v24 = vld [vmem:[#allocation6 + $0x70] sm:$0xff]  ;;  %v416_v2 = vmax.f32 %v1056_v14, %v1058_v15  ;;  %v437_v9 = vmax.f32 %v1064_v18, %v1066_v19 }
  0x14   :  { %v127_v23 = vadd.f32 %v1070_v21, %v1068_v20  ;;  %v1078_v25 = vld [vmem:[#allocation6 + $0x78] sm:$0xff]  ;;  %v1080_v26 = vld [vmem:[#allocation6 + $0x30] sm:$0xff]  ;;  %v1088_v30 = vld [vmem:[#allocation6 + $0xc0] sm:$0xff]  ;;  %v434_v4 = vmax.f32 %v1068_v20, %v1070_v21  ;;  %vm399_vm8 = vcmask 1045509   ;;  %vm401_vm9 = vcmask 1046534  }
  0x15   :  { %119 = vadd.xlane.f32.xlu1 %v118_v10  ;;  %v1082_v27 = vld [vmem:[#allocation6 + $0x38] sm:$0xff]  ;;  %v124_v28 = vadd.f32 %v1078_v25, %v1076_v24  ;;  %v1090_v31 = vld [vmem:[#allocation6 + $0xc8] sm:$0xff]  ;;  %v1092_v32 = vld [vmem:[#allocation6 + $0xa0] sm:$0xff]  ;;  %v431_v21 = vmax.f32 %v1076_v24, %v1078_v25  ;;  %vm403_vm10 = vcmask 1047559   ;;  %vm807_vm11 = vcmask 1043456  }
  0x16   :  { %107 = vadd.xlane.f32.xlu0 %v106_v11  ;;  %v112_v29 = vadd.f32 %v1082_v27, %v1080_v26  ;;  %v1094_v33 = vld [vmem:[#allocation6 + $0xa8] sm:$0xff]  ;;  %v139_v34 = vadd.f32 %v1090_v31, %v1088_v30  ;;  %v1100_v36 = vld [vmem:[#allocation6 + $0xb0] sm:$0xff]  ;;  %v1102_v37 = vld [vmem:[#allocation6 + $0xb8] sm:$0xff]  ;;  %v419_v18 = vmax.f32 %v1080_v26, %v1082_v27  ;;  %vm800_vm14 = vcmask 31744  }
  0x17   :  { %v133_v35 = vadd.f32 %v1094_v33, %v1092_v32  ;;  %v1104_v38 = vld [vmem:[#allocation6 + $0xd0] sm:$0xff]  ;;  %v1106_v39 = vld [vmem:[#allocation6 + $0xd8] sm:$0xff]  ;;  %v136_v40 = vadd.f32 %v1102_v37, %v1100_v36  ;;  %v1112_v42 = vld [vmem:[#allocation6 + $0x100] sm:$0xff]  ;;  %v440_v20 = vmax.f32 %v1092_v32, %v1094_v33 }
  0x18   :  { %v142_v41 = vadd.f32 %v1106_v39, %v1104_v38  ;;  %v1114_v43 = vld [vmem:[#allocation6 + $0x108] sm:$0xff]  ;;  %v1116_v44 = vld [vmem:[#allocation6 + $0xe0] sm:$0xff]  ;;  %v1124_v48 = vld [vmem:[#allocation6 + $0x110] sm:$0xff] }
  0x19   :  { %122 = vadd.xlane.f32.xlu1 %v121_v16  ;;  %v1118_v45 = vld [vmem:[#allocation6 + $0xe8] sm:$0xff]  ;;  %v151_v46 = vadd.f32 %v1114_v43, %v1112_v42  ;;  %v1126_v49 = vld [vmem:[#allocation6 + $0x118] sm:$0xff]  ;;  %v1136_v54 = vld [vmem:[#allocation6 + $0xf0] sm:$0xff] }
  0x1a   :  { %110 = vadd.xlane.f32.xlu0 %v109_v17  ;;  %v145_v47 = vadd.f32 %v1118_v45, %v1116_v44  ;;  %v154_v51 = vadd.f32 %v1126_v49, %v1124_v48  ;;  %v1138_v55 = vld [vmem:[#allocation6 + $0xf8] sm:$0xff]  ;;  %v1144_v58 = vld [vmem:[#allocation6 + $0x140] sm:$0xff]  ;;  %v1146_v59 = vld [vmem:[#allocation6 + $0x148] sm:$0xff] }
  0x1b   :  { %v148_v56 = vadd.f32 %v1138_v55, %v1136_v54  ;;  %v1148_v60 = vld [vmem:[#allocation6 + $0x120] sm:$0xff]  ;;  %v1150_v61 = vld [vmem:[#allocation6 + $0x128] sm:$0xff]  ;;  %v163_v62 = vadd.f32 %v1146_v59, %v1144_v58  ;;  %v1156_v0 = vld [vmem:[#allocation6 + $0x150] sm:$0xff] }
  0x1c   :  { %v157_v63 = vadd.f32 %v1150_v61, %v1148_v60  ;;  %v1158_v1 = vld [vmem:[#allocation6 + $0x158] sm:$0xff]  ;;  %v1168_v6 = vld [vmem:[#allocation6 + $0x130] sm:$0xff]  ;;  %v1176_v10 = vld [vmem:[#allocation6 + $0x180] sm:$0xff] }
  0x1d   :  { %131 = vadd.xlane.f32.xlu1 %v130_v22  ;;  %v166_v3 = vadd.f32 %v1158_v1, %v1156_v0  ;;  %v1170_v7 = vld [vmem:[#allocation6 + $0x138] sm:$0xff]  ;;  %v1178_v11 = vld [vmem:[#allocation6 + $0x188] sm:$0xff]  ;;  %v1180_v14 = vld [vmem:[#allocation6 + $0x160] sm:$0xff]  ;;  %v449_v22 = vmax.f32 %v1104_v38, %v1106_v39 }
  0x1e   :  { %128 = vadd.xlane.f32.xlu0 %v127_v23  ;;  %v160_v8 = vadd.f32 %v1170_v7, %v1168_v6  ;;  %v1182_v15 = vld [vmem:[#allocation6 + $0x168] sm:$0xff]  ;;  %v175_v12 = vadd.f32 %v1178_v11, %v1176_v10  ;;  %v1188_v16 = vld [vmem:[#allocation6 + $0x190] sm:$0xff]  ;;  %v1190_v17 = vld [vmem:[#allocation6 + $0x198] sm:$0xff]  ;;  %v446_v23 = vmax.f32 %v1088_v30, %v1090_v31  ;;  %v452_v30 = vmax.f32 %v1116_v44, %v1118_v45 }
  0x1f   :  { %v169_v13 = vadd.f32 %v1182_v15, %v1180_v14  ;;  %v178_v19 = vadd.f32 %v1190_v17, %v1188_v16  ;;  %v1204_v26 = vld [vmem:[#allocation6 + $0x1a0] sm:$0xff]  ;;  %v91_v27 = vld [vmem:[#allocation6 + $0x1a8] sm:$0xff]  ;;  %v97_v24 = vld [vmem:[#allocation6 + $0x1d8] sm:$0xff]  ;;  %v443_v31 = vmax.f32 %v1100_v36, %v1102_v37  ;;  %v464_v36 = vmax.f32 %v1148_v60, %v1150_v61 }
  0x20   :  { %v181_v32 = vadd.f32 %v91_v27, %v1204_v26  ;;  %v94_v25 = vld [vmem:[#allocation6 + $0x1c0] sm:$0xff]  ;;  %v455_v37 = vmax.f32 %v1136_v54, %v1138_v55  ;;  %v100_v45 = vld [vmem:[#allocation6 + $0x1f0] sm:$0xff]  ;;  %v482_v54 = vmax.f32 %v1176_v10, %v1178_v11  ;;  %v476_v55 = vmax.f32 %v1180_v14, %v1182_v15  ;;  %v709_v14 = vld [vmem:[%s1423_s2 + $0x18] sm:$0xff] }
  0x21   :  { %125 = vadd.xlane.f32.xlu1 %v124_v28  ;;  %v84_v28 = vld [vmem:[#allocation6 + $0x170] sm:$0xff]  ;;  %v488_v60 = vmax.f32 %v1204_v26, %v91_v27  ;;  %924 = vmatprep.subr.mxu0 %v709_v14 }
  0x22   :  { %113 = vadd.xlane.f32.xlu0 %v112_v29  ;;  %v85_v29 = vld [vmem:[#allocation6 + $0x178] sm:$0xff]  ;;  %925 = vmatpush3.msra.mxu0 %v709_v14  ;;  %v706_v26 = vld [vmem:[%s1423_s2] sm:$0xff] }
  0x23   :  { %v172_v33 = vadd.f32 %v85_v29, %v84_v28 }
  0x25   :  { %140 = vadd.xlane.f32.xlu1 %v139_v34  ;;  %v96_v34 = vld [vmem:[#allocation6 + $0x1d0] sm:$0xff] }
  0x26   :  { %134 = vadd.xlane.f32.xlu0 %v133_v35  ;;  %v95_v35 = vld [vmem:[#allocation6 + $0x1c8] sm:$0xff]  ;;  %v190_v38 = vadd.f32 %v97_v24, %v96_v34 }
  0x27   :  { %v187_v39 = vadd.f32 %v95_v35, %v94_v25 }
  0x29   :  { %137 = vadd.xlane.f32.xlu1 %v136_v40  ;;  %v461_v40 = vmax.f32 %v1124_v48, %v1126_v49  ;;  %v101_v48 = vld [vmem:[#allocation6 + $0x1f8] sm:$0xff]  ;;  %v467_v49 = vmax.f32 %v1168_v6, %v1170_v7 }
  0x2a   :  { %143 = vadd.xlane.f32.xlu0 %v142_v41  ;;  %v458_v41 = vmax.f32 %v1112_v42, %v1114_v43  ;;  %v473_v42 = vmax.f32 %v1156_v0, %v1158_v1  ;;  %v470_v43 = vmax.f32 %v1144_v58, %v1146_v59  ;;  %v997_v58 = vmov 0.0  }
  0x2b   :  { %36 = vst.msk [vmem:[#allocation2] sm:$0xff] %vm35_vm0, %v997_v58  ;;  %v494_v59 = vmax.f32 %v94_v25, %v95_v35  ;;  %v231_v1 = vlaneseq }
  0x2d   :  { %152 = vadd.xlane.f32.xlu1 %v151_v46  ;;  %v98_v46 = vld [vmem:[#allocation6 + $0x1e0] sm:$0xff] }
  0x2e   :  { %146 = vadd.xlane.f32.xlu0 %v145_v47  ;;  %v99_v47 = vld [vmem:[#allocation6 + $0x1e8] sm:$0xff] }
  0x2f   :  { %v500_v0 = vmax.f32 %v98_v46, %v99_v47 }
  0x31   :  { %411 = vmax.xlane.f32.xlu1 %v410_v50  ;;  %v92_v50 = vld [vmem:[#allocation6 + $0x1b0] sm:$0xff] }
  0x32   :  { %155 = vadd.xlane.f32.xlu0 %v154_v51  ;;  %v93_v51 = vld [vmem:[#allocation6 + $0x1b8] sm:$0xff] }
  0x33   :  { %v184_v44 = vadd.f32 %v93_v51, %v92_v50  ;;  %v491_v61 = vmax.f32 %v92_v50, %v93_v51 }
  0x35   :  { %423 = vmax.xlane.f32.xlu1 %v422_v52  ;;  %v193_v52 = vadd.f32 %v99_v47, %v98_v46 }
  0x36   :  { %414 = vmax.xlane.f32.xlu0 %v413_v53  ;;  %v196_v53 = vadd.f32 %v101_v48, %v100_v45 }
  0x39   :  { %149 = vadd.xlane.f32.xlu1 %v148_v56  ;;  %v479_v56 = vmax.f32 %v84_v28, %v85_v29 }
  0x3a   :  { %426 = vmax.xlane.f32.xlu0 %v425_v57  ;;  %v485_v57 = vmax.f32 %v1188_v16, %v1190_v17  ;;  %v708_v17 = vld [vmem:[%s1423_s2 + $0x10] sm:$0xff] }
  0x3b   :  { %926 = vmatprep.subr.mxu0 %v708_v17 }
  0x3c   :  { %927 = vmatpush3.msra.mxu0 %v708_v17 }
  0x3d   :  { %164 = vadd.xlane.f32.xlu1 %v163_v62  ;;  %v497_v62 = vmax.f32 %v96_v34, %v97_v24 }
  0x3e   :  { %158 = vadd.xlane.f32.xlu0 %v157_v63  ;;  %v503_v63 = vmax.f32 %v100_v45, %v101_v48 }
  0x41   :  { %417 = vmax.xlane.f32.xlu1 %v416_v2  ;;  %v232_v2 = vand.u32 127, %v231_v1 }
  0x42   :  { %167 = vadd.xlane.f32.xlu0 %v166_v3  ;;  %v998_v3 = vmov -inf  }
  0x43   :  { %37 = vst.msk [vmem:[#allocation3] sm:$0xff] %vm35_vm0, %v998_v3  ;;  %v244_v10 = vadd.s32 4294967280, %v232_v2  ;;  %v251_v29 = vadd.s32 4294967272, %v232_v2 }
  0x45   :  { %435 = vmax.xlane.f32.xlu1 %v434_v4  ;;  %v234_v4 = vshrl.u32 %v231_v1, 7 }
  0x46   :  { %429 = vmax.xlane.f32.xlu0 %v428_v5  ;;  %v237_v5 = vadd.s32 4294967288, %v232_v2 }
  0x47   :  { %v1234_v7 = vsub.s32 %v232_v2, %v234_v4  ;;  %v1243_v16 = vsub.s32 %v244_v10, %v234_v4 }
  0x49   :  { %161 = vadd.xlane.f32.xlu1 %v160_v8 }
  0x4a   :  { %438 = vmax.xlane.f32.xlu0 %v437_v9  ;;  %v1236_v9 = vsub.s32 %v237_v5, %v234_v4 }
  0x4d   :  { %176 = vadd.xlane.f32.xlu1 %v175_v12 }
  0x4e   :  { %170 = vadd.xlane.f32.xlu0 %v169_v13 }
  0x51   :  { %420 = vmax.xlane.f32.xlu1 %v419_v18 }
  0x52   :  { %179 = vadd.xlane.f32.xlu0 %v178_v19 }
  0x55   :  { %441 = vmax.xlane.f32.xlu1 %v440_v20  ;;  %v707_v20 = vld [vmem:[%s1423_s2 + $0x8] sm:$0xff] }
  0x56   :  { %432 = vmax.xlane.f32.xlu0 %v431_v21  ;;  %928 = vmatprep.subr.mxu0 %v707_v20 }
  0x57   :  { %929 = vmatpush3.msra.mxu0 %v707_v20 }
  0x58   :  { %930 = vmatprep.subr.mxu0 %v706_v26 }
  0x59   :  { %450 = vmax.xlane.f32.xlu1 %v449_v22  ;;  %931 = vmatpush3.msra.mxu0 %v706_v26 }
  0x5a   :  { %447 = vmax.xlane.f32.xlu0 %v446_v23 }
  0x5d   :  { %182 = vadd.xlane.f32.xlu1 %v181_v32 }
  0x5e   :  { %173 = vadd.xlane.f32.xlu0 %v172_v33 }
  0x61   :  { %191 = vadd.xlane.f32.xlu1 %v190_v38  ;;  %v1263_v38 = vsub.s32 %v251_v29, %v234_v4 }
  0x62   :  { %188 = vadd.xlane.f32.xlu0 %v187_v39 }
  0x65   :  { %453 = vmax.xlane.f32.xlu1 %v452_v30 }
  0x66   :  { %444 = vmax.xlane.f32.xlu0 %v443_v31 }
  0x69   :  { %462 = vmax.xlane.f32.xlu1 %v461_v40 }
  0x6a   :  { %459 = vmax.xlane.f32.xlu0 %v458_v41 }
  0x6d   :  { %194 = vadd.xlane.f32.xlu1 %v193_v52 }
  0x6e   :  { %185 = vadd.xlane.f32.xlu0 %v184_v44 }
  0x71   :  { %465 = vmax.xlane.f32.xlu1 %v464_v36 }
  0x72   :  { %456 = vmax.xlane.f32.xlu0 %v455_v37 }
  0x75   :  { %474 = vmax.xlane.f32.xlu1 %v473_v42 }
  0x76   :  { %471 = vmax.xlane.f32.xlu0 %v470_v43 }
  0x79   :  { %468 = vmax.xlane.f32.xlu1 %v467_v49 }
  0x7a   :  { %197 = vadd.xlane.f32.xlu0 %v196_v53 }
  0x7d   :  { %483 = vmax.xlane.f32.xlu1 %v482_v54 }
  0x7e   :  { %477 = vmax.xlane.f32.xlu0 %v476_v55 }
  0x81   :  { %480 = vmax.xlane.f32.xlu1 %v479_v56 }
  0x82   :  { %486 = vmax.xlane.f32.xlu0 %v485_v57 }
  0x85   :  { %495 = vmax.xlane.f32.xlu1 %v494_v59 }
  0x86   :  { %489 = vmax.xlane.f32.xlu0 %v488_v60 }
  0x89   :  { %492 = vmax.xlane.f32.xlu1 %v491_v61 }
  0x8a   :  { %498 = vmax.xlane.f32.xlu0 %v497_v62 }
  0x8d   :  { %504 = vmax.xlane.f32.xlu1 %v503_v63 }
  0x8e   :  { %501 = vmax.xlane.f32.xlu0 %v500_v0 }
  0x9a   :  { %v117_v6 = vpop.xlane.xlu1 %116 }
  0x9b   :  { %v105_v8 = vpop.xlane.xlu0 %104  ;;  %v261_v15 = vrot.slane %v117_v6, %v1234_v7 }
  0x9c   :  { %v236_v18 = vrot.slane %v105_v8, %v1234_v7 }
  0x9e   :  { %v120_v11 = vpop.xlane.xlu1 %119 }
  0x9f   :  { %v265_v12 = vrot.slane %v120_v11, %v1236_v9  ;;  %v108_v13 = vpop.xlane.xlu0 %107 }
  0xa0   :  { %v241_v19 = vrot.slane %v108_v13, %v1236_v9 }
  0xa1   :  { %v266_v21 = vsel %vm242_vm1, %v265_v12, %v261_v15 }
  0xa2   :  { %v243_v22 = vsel %vm242_vm1, %v241_v19, %v236_v18  ;;  %v123_v23 = vpop.xlane.xlu1 %122 }
  0xa3   :  { %v270_v27 = vrot.slane %v123_v23, %v1243_v16  ;;  %v111_v28 = vpop.xlane.xlu0 %110 }
  0xa4   :  { %v248_v32 = vrot.slane %v111_v28, %v1243_v16 }
  0xa5   :  { %v271_v33 = vsel %vm249_vm2, %v270_v27, %v266_v21 }
  0xa6   :  { %v250_v34 = vsel %vm249_vm2, %v248_v32, %v243_v22  ;;  %v132_v24 = vpop.xlane.xlu1 %131 }
  0xa7   :  { %v284_v25 = vrot.slane %v132_v24, %v1236_v9  ;;  %v129_v35 = vpop.xlane.xlu0 %128 }
  0xa8   :  { %v280_v39 = vrot.slane %v129_v35, %v1234_v7 }
  0xaa   :  { %v285_v30 = vsel %vm242_vm1, %v284_v25, %v280_v39  ;;  %v126_v31 = vpop.xlane.xlu1 %125 }
  0xab   :  { %v275_v40 = vrot.slane %v126_v31, %v1263_v38  ;;  %v114_v41 = vpop.xlane.xlu0 %113 }
  0xac   :  { %v255_v46 = vrot.slane %v114_v41, %v1263_v38 }
  0xad   :  { %v276_v47 = vsel %vm256_vm3, %v275_v40, %v271_v33 }
  0xae   :  { %v257_v50 = vsel %vm256_vm3, %v255_v46, %v250_v34  ;;  %v141_v51 = vpop.xlane.xlu1 %140 }
  0xaf   :  { %v392_v52 = vsel %vm391_vm4, %v276_v47, %v257_v50  ;;  %v135_v44 = vpop.xlane.xlu0 %134  ;;  %v299_v48 = vrot.slane %v141_v51, %v1234_v7 }
  0xb0   :  { %v289_v36 = vrot.slane %v135_v44, %v1243_v16 }
  0xb2   :  { %v290_v37 = vsel %vm249_vm2, %v289_v36, %v285_v30  ;;  %v138_v42 = vpop.xlane.xlu1 %137 }
  0xb3   :  { %v294_v43 = vrot.slane %v138_v42, %v1263_v38  ;;  %v144_v45 = vpop.xlane.xlu0 %143 }
  0xb4   :  { %v303_v49 = vrot.slane %v144_v45, %v1236_v9 }
  0xb5   :  { %v295_v53 = vsel %vm256_vm3, %v294_v43, %v290_v37 }
  0xb6   :  { %v394_v54 = vsel %vm393_vm5, %v295_v53, %v392_v52  ;;  %v304_v55 = vsel %vm242_vm1, %v303_v49, %v299_v48  ;;  %v153_v56 = vpop.xlane.xlu1 %152 }
  0xb7   :  { %v147_v57 = vpop.xlane.xlu0 %146  ;;  %v318_v62 = vrot.slane %v153_v56, %v1234_v7 }
  0xb8   :  { %v308_v58 = vrot.slane %v147_v57, %v1243_v16 }
  0xba   :  { %v309_v59 = vsel %vm249_vm2, %v308_v58, %v304_v55  ;;  %v412_v60 = vpop.xlane.xlu1 %411 }
  0xbb   :  { %v156_v61 = vpop.xlane.xlu0 %155  ;;  %v541_v3 = vrot.slane %v412_v60, %v1234_v7 }
  0xbc   :  { %v322_v63 = vrot.slane %v156_v61, %v1236_v9 }
  0xbe   :  { %v323_v0 = vsel %vm242_vm1, %v322_v63, %v318_v62  ;;  %v424_v1 = vpop.xlane.xlu1 %423 }
  0xbf   :  { %v415_v2 = vpop.xlane.xlu0 %414  ;;  %v560_v11 = vrot.slane %v424_v1, %v1234_v7 }
  0xc0   :  { %v545_v4 = vrot.slane %v415_v2, %v1236_v9 }
  0xc2   :  { %v546_v5 = vsel %vm242_vm1, %v545_v4, %v541_v3  ;;  %v150_v6 = vpop.xlane.xlu1 %149 }
  0xc3   :  { %v313_v8 = vrot.slane %v150_v6, %v1263_v38  ;;  %v427_v10 = vpop.xlane.xlu0 %426 }
  0xc4   :  { %v564_v14 = vrot.slane %v427_v10, %v1236_v9 }
  0xc5   :  { %v314_v15 = vsel %vm256_vm3, %v313_v8, %v309_v59 }
  0xc6   :  { %v396_v12 = vsel %vm395_vm6, %v314_v15, %v394_v54  ;;  %v565_v13 = vsel %vm242_vm1, %v564_v14, %v560_v11  ;;  %v1294_v17 = vpop.xlane.xlu1 %164 }
  0xc7   :  { %v159_v18 = vpop.xlane.xlu0 %158  ;;  %v337_v8 = vrot.slane %v1294_v17, %v1234_v7 }
  0xc8   :  { %v327_v27 = vrot.slane %v159_v18, %v1243_v16 }
  0xca   :  { %v418_v19 = vpop.xlane.xlu1 %417  ;;  %v328_v24 = vsel %vm249_vm2, %v327_v27, %v323_v0 }
  0xcb   :  { %v550_v20 = vrot.slane %v418_v19, %v1243_v16  ;;  %v168_v21 = vpop.xlane.xlu0 %167 }
  0xcc   :  { %v341_v4 = vrot.slane %v168_v21, %v1236_v9 }
  0xcd   :  { %v551_v22 = vsel %vm249_vm2, %v550_v20, %v546_v5 }
  0xce   :  { %v436_v23 = vpop.xlane.xlu1 %435  ;;  %v342_v18 = vsel %vm242_vm1, %v341_v4, %v337_v8 }
  0xcf   :  { %v430_v26 = vpop.xlane.xlu0 %429  ;;  %v579_v54 = vrot.slane %v436_v23, %v1234_v7 }
  0xd0   :  { %v569_v28 = vrot.slane %v430_v26, %v1243_v16 }
  0xd2   :  { %v570_v29 = vsel %vm249_vm2, %v569_v28, %v565_v13  ;;  %v162_v32 = vpop.xlane.xlu1 %161 }
  0xd3   :  { %v332_v33 = vrot.slane %v162_v32, %v1263_v38  ;;  %v439_v34 = vpop.xlane.xlu0 %438 }
  0xd4   :  { %v583_v49 = vrot.slane %v439_v34, %v1236_v9 }
  0xd5   :  { %v333_v25 = vsel %vm256_vm3, %v332_v33, %v328_v24 }
  0xd6   :  { %v398_v35 = vsel %vm397_vm7, %v333_v25, %v396_v12  ;;  %v177_v39 = vpop.xlane.xlu1 %176  ;;  %v584_v57 = vsel %vm242_vm1, %v583_v49, %v579_v54  ;;  %v102_v25 = vld [vmem:[#allocation2] sm:$0xff] }
  0xd7   :  { %v171_v30 = vpop.xlane.xlu0 %170  ;;  %v356_v15 = vrot.slane %v177_v39, %v1234_v7 }
  0xd8   :  { %v346_v5 = vrot.slane %v171_v30, %v1243_v16 }
  0xda   :  { %v421_v31 = vpop.xlane.xlu1 %420  ;;  %v347_v21 = vsel %vm249_vm2, %v346_v5, %v342_v18 }
  0xdb   :  { %v180_v40 = vpop.xlane.xlu0 %179  ;;  %v555_v41 = vrot.slane %v421_v31, %v1263_v38 }
  0xdc   :  { %v360_v6 = vrot.slane %v180_v40, %v1236_v9 }
  0xdd   :  { %v556_v51 = vsel %vm256_vm3, %v555_v41, %v551_v22 }
  0xde   :  { %v442_v46 = vpop.xlane.xlu1 %441  ;;  %v361_v17 = vsel %vm242_vm1, %v360_v6, %v356_v15 }
  0xdf   :  { %v433_v47 = vpop.xlane.xlu0 %432  ;;  %v588_v53 = vrot.slane %v442_v46, %v1243_v16 }
  0xe0   :  { %v574_v50 = vrot.slane %v433_v47, %v1263_v38 }
  0xe1   :  { %v589_v59 = vsel %vm249_vm2, %v588_v53, %v584_v57 }
  0xe2   :  { %v575_v52 = vsel %vm256_vm3, %v574_v50, %v570_v29  ;;  %v1309_v44 = vpop.xlane.xlu1 %450 }
  0xe3   :  { %v690_v36 = vsel %vm391_vm4, %v575_v52, %v556_v51  ;;  %v1312_v37 = vpop.xlane.xlu0 %447 }
  0xe4   :  { %v598_v52 = vrot.slane %v1312_v37, %v1234_v7 }
  0xe6   :  { %v183_v42 = vpop.xlane.xlu1 %182 }
  0xe7   :  { %v174_v43 = vpop.xlane.xlu0 %173  ;;  %v365_v10 = vrot.slane %v183_v42, %v1243_v16 }
  0xe8   :  { %v351_v11 = vrot.slane %v174_v43, %v1263_v38 }
  0xe9   :  { %v366_v23 = vsel %vm249_vm2, %v365_v10, %v361_v17 }
  0xea   :  { %v192_v45 = vpop.xlane.xlu1 %191  ;;  %v352_v26 = vsel %vm256_vm3, %v351_v11, %v347_v21 }
  0xeb   :  { %v189_v48 = vpop.xlane.xlu0 %188  ;;  %v379_v19 = vrot.slane %v192_v45, %v1236_v9  ;;  %v400_v34 = vsel %vm399_vm8, %v352_v26, %v398_v35  ;;  %v602_v35 = vrot.slane %v1309_v44, %v1236_v9 }
  0xec   :  { %v375_v20 = vrot.slane %v189_v48, %v1234_v7 }
  0xee   :  { %v1317_v55 = vpop.xlane.xlu1 %453  ;;  %v380_v32 = vsel %vm242_vm1, %v379_v19, %v375_v20 }
  0xef   :  { %v445_v56 = vpop.xlane.xlu0 %444  ;;  %v607_v42 = vrot.slane %v1317_v55, %v1243_v16 }
  0xf0   :  { %v593_v58 = vrot.slane %v445_v56, %v1263_v38 }
  0xf2   :  { %v594_v60 = vsel %vm256_vm3, %v593_v58, %v589_v59  ;;  %v1323_v61 = vpop.xlane.xlu1 %462  ;;  %v603_v59 = vsel %vm242_vm1, %v602_v35, %v598_v52 }
  0xf3   :  { %v1326_v62 = vsel %vm393_vm5, %v594_v60, %v690_v36  ;;  %v1328_v63 = vpop.xlane.xlu0 %459  ;;  %v621_v43 = vrot.slane %v1323_v61, %v1236_v9 }
  0xf4   :  { %v617_v45 = vrot.slane %v1328_v63, %v1234_v7 }
  0xf6   :  { %v195_v0 = vpop.xlane.xlu1 %194 }
  0xf7   :  { %v186_v1 = vpop.xlane.xlu0 %185  ;;  %v384_v22 = vrot.slane %v195_v0, %v1243_v16  ;;  %v608_v0 = vsel %vm249_vm2, %v607_v42, %v603_v59 }
  0xf8   :  { %v370_v12 = vrot.slane %v186_v1, %v1263_v38  ;;  %v622_v1 = vsel %vm242_vm1, %v621_v43, %v617_v45 }
  0xf9   :  { %v385_v24 = vsel %vm249_vm2, %v384_v22, %v380_v32 }
  0xfa   :  { %v1330_v2 = vpop.xlane.xlu1 %465  ;;  %v371_v28 = vsel %vm256_vm3, %v370_v12, %v366_v23 }
  0xfb   :  { %v1332_v3 = vpop.xlane.xlu0 %456  ;;  %v402_v39 = vsel %vm401_vm9, %v371_v28, %v400_v34  ;;  %v626_v48 = vrot.slane %v1330_v2, %v1243_v16 }
  0xfc   :  { %v612_v49 = vrot.slane %v1332_v3, %v1263_v38 }
  0xfd   :  { %v627_v4 = vsel %vm249_vm2, %v626_v48, %v622_v1 }
  0xfe   :  { %v475_v14 = vpop.xlane.xlu1 %474  ;;  %v613_v5 = vsel %vm256_vm3, %v612_v49, %v608_v0 }
  0xff   :  { %v472_v13 = vpop.xlane.xlu0 %471  ;;  %v640_v44 = vrot.slane %v475_v14, %v1236_v9  ;;  %v692_v21 = vsel %vm395_vm6, %v613_v5, %v1326_v62 }
 0x100   :  { %v636_v37 = vrot.slane %v472_v13, %v1234_v7 }
 0x102   :  { %v469_v27 = vpop.xlane.xlu1 %468  ;;  %v641_v6 = vsel %vm242_vm1, %v640_v44, %v636_v37 }
 0x103   :  { %v198_v29 = vpop.xlane.xlu0 %197  ;;  %v631_v54 = vrot.slane %v469_v27, %v1263_v38  ;;  %v409_v27 = vld [vmem:[#allocation3] sm:$0xff] }
 0x104   :  { %v389_v33 = vrot.slane %v198_v29, %v1263_v38 }
 0x105   :  { %v632_v10 = vsel %vm256_vm3, %v631_v54, %v627_v4 }
 0x106   :  { %v390_v30 = vsel %vm256_vm3, %v389_v33, %v385_v24  ;;  %v484_v31 = vpop.xlane.xlu1 %483  ;;  %v693_v22 = vsel %vm397_vm7, %v632_v10, %v692_v21  ;;  %v795_v33 = vstv %s1421_s0  ;;  %s999_s0 = smov [#allocation9]  }
 0x107   :  { %v404_v40 = vsel %vm403_vm10, %v390_v30, %v402_v39  ;;  %v478_v41 = vpop.xlane.xlu0 %477  ;;  %v655_v2 = vrot.slane %v484_v31, %v1234_v7 }
 0x108   :  { %v406_v46 = vadd.f32 %v404_v40, %v102_v25  ;;  %v645_v55 = vrot.slane %v478_v41, %v1243_v16 }
 0x10a   :  { %408 = vst.msk [vmem:[#allocation2] sm:$0xff] %vm35_vm0, %v406_v46  ;;  %v481_v47 = vpop.xlane.xlu1 %480  ;;  %v646_v11 = vsel %vm249_vm2, %v645_v55, %v641_v6 }
 0x10b   :  { %v487_v50 = vpop.xlane.xlu0 %486  ;;  %v650_v60 = vrot.slane %v481_v47, %v1263_v38 }
 0x10c   :  { %v659_v56 = vrot.slane %v487_v50, %v1236_v9 }
 0x10d   :  { %v651_v12 = vsel %vm256_vm3, %v650_v60, %v646_v11 }
 0x10e   :  { %v496_v51 = vpop.xlane.xlu1 %495  ;;  %v660_v14 = vsel %vm242_vm1, %v659_v56, %v655_v2  ;;  %v694_v26 = vsel %vm399_vm8, %v651_v12, %v693_v22 }
 0x10f   :  { %v490_v36 = vpop.xlane.xlu0 %489  ;;  %v674_v13 = vrot.slane %v496_v51, %v1234_v7 }
 0x110   :  { %v664_v61 = vrot.slane %v490_v36, %v1243_v16 }
 0x111   :  { %v703_v53 = vld [vmem:[#allocation2] sm:$0xff] }
 0x112   :  { %v493_v57 = vpop.xlane.xlu1 %492  ;;  %v704_v58 = vmul.f32 0.00390625, %v703_v53  ;;  %v665_v18 = vsel %vm249_vm2, %v664_v61, %v660_v14 }
 0x113   :  { %v499_v63 = vpop.xlane.xlu0 %498  ;;  %v669_v3 = vrot.slane %v493_v57, %v1263_v38 }
 0x114   :  { %932 = vmatprep.mubr.msk.f32.mxu0 %vm35_vm0, %v704_v58  ;;  %v678_v8 = vrot.slane %v499_v63, %v1236_v9 }
 0x115   :  { %v670_v9 = vsel %vm256_vm3, %v669_v3, %v665_v18 }
 0x116   :  { %v505_v15 = vpop.xlane.xlu1 %504  ;;  %v679_v23 = vsel %vm242_vm1, %v678_v8, %v674_v13  ;;  %v695_v28 = vsel %vm401_vm9, %v670_v9, %v694_v26 }
 0x117   :  { %v502_v19 = vpop.xlane.xlu0 %501  ;;  %v688_v20 = vrot.slane %v505_v15, %v1263_v38 }
 0x118   :  { %v683_v17 = vrot.slane %v502_v19, %v1243_v16  ;;  %v710_v16 = vld [vmem:[%s1424_s3] sm:$0xf]  ;;  %s900_s3 = sshll.u32 %s999_s0, 4  ;;  %s901_s3 = int_to_ptr.vmem [resolvable:$true] %s900_s3 }
 0x119   :  { %935 = vmatprep.subr.msk.mxu1 %vm807_vm11, %v710_v16  ;;  %s970_s6 = scalar_lea.vmem %s901_s3, 128  ;;  %p975_p6 = scmp.lt.s32.totalorder %s901_s3, %s901_s3 }
 0x11a   :  { %v684_v7 = vsel %vm249_vm2, %v683_v17, %v679_v23  ;;  %936 = vmatpush3.msk.msra.mxu1 %vm807_vm11, %v710_v16  ;;  %p971_p5 = scmp.ne.s32.totalorder %s901_s3, %s970_s6  ;;  %p976_p7 = scmp.lt.s32.totalorder %s970_s6, %s970_s6 }
 0x11b   :  { %v689_v38 = vsel %vm256_vm3, %v688_v20, %v684_v7 }
 0x11c   :  { %v696_v29 = vsel %vm403_vm10, %v689_v38, %v695_v28  ;;  %p977_p8 = por %p976_p7, %p975_p6 }
 0x11d   :  { %v698_v62 = vmax.f32 %v409_v27, %v696_v29 }
 0x11e   :  { %p978_p9 = pnand %p977_p8, %p971_p5 }
 0x11f   :  { %699 = vst.msk [vmem:[#allocation3] sm:$0xff] %vm35_vm0, %v698_v62 }
 0x126   :  { %v705_v32 = vld [vmem:[#allocation3] sm:$0xff] }
 0x127   :  { %933 = vmatmul.mubr.msk.f32.vlgmr.msra.gmra.mxu0 %vm35_vm0, %v705_v32 }
 0x1e7   :  { %v934_v34 = vpop.f32.mrf.mxu0 }
 0x1e8   :  { %v797_v25 = vmul.f32 %v934_v34, %v795_v33  ;;  %vm794_vm12 = vcmp.gt.f32.partialorder %v934_v34, 0.0 }
 0x1e9   :  { %v784_v24 = vpop.f32.mrf.mxu0 }
 0x1ea   :  { %vm793_vm13 = vcmp.gt.f32.partialorder %v784_v24, 0.0  ;;  %v796_v39 = vmul.f32 %v795_v33, %v784_v24  ;;  %v799_v31 = vsel %vm794_vm12, %v934_v34, %v797_v25 }
 0x1ec   :  { %v798_v30 = vsel %vm793_vm13, %v784_v24, %v796_v39 }
 0x1ed   :  { %937 = vmatprep.mubr.msk.f32.mxu1 %vm800_vm14, %v798_v30 }
 0x1ee   :  { %938 = vmatmul.mubr.msk.f32.vlgmr.msra.gmra.mxu1 %vm800_vm14, %v799_v31 }
 0x2ae   :  { %v939_v40 = vpop.f32.mrf.mxu1 }
 0x2b0   :  { %v877_v41 = vpop.f32.mrf.mxu1 }
 0x2b1   :  { %v886_v46 = vadd.f32 %v939_v40, %v877_v41 }
 0x2b3   :  { %v914_v47 = vmul.f32 -1.442695, %v886_v46 }
 0x2b5   :  { %946 = vpow2.f32 %v914_v47 }
 0x2c2   :  { %v947_v50 = vpop.eup %946 }
 0x2c3   :  { %v890_v51 = vadd.f32 1.0, %v947_v50 }
 0x2c5   :  { %948 = vrcp.f32 %v890_v51 }
 0x2d2   :  { %v949_v35 = vpop.eup %948 }
 0x2d3   :  { %893 = vst.msk [vmem:[#allocation9] sm:$0xff] %vm35_vm0, %v949_v35 }
 0x2d4   :  { %981 = shalt.err (!%p978_p9)
}
 0x2d5   :  { %903 = dma.vmem_to_hbm [thread:$0]  %s901_s3, 128, %s1425_s4, [#allocation8]  }
 0x2d6   :  { %992 = dma.done.wait [#allocation8], 128  }
 0x2d7   :  { %993 = vsyncadd [#allocation8], 4294967168 }
 0x2d8   :  { %907 = vsyncpa [#allocation7], 1 }
 0x2d9   :  { %908 = vsyncpa [#allocation8], 1 }

</bundles_post_ra>
